<compile_context>
chip_gen: v7x
topology: tpu7x:2x2x1
jax: 0.10.0
libtpu: 0.0.40
codegen_flags: <defaults>
</compile_context>

<pallas_src>
from functools import partial

import jax
import jax.numpy as jnp
from jax.experimental import pallas as pl
from jax.experimental.pallas import tpu as pltpu


def _round_up(v, m):
    return (v + m - 1) // m * m


def _make_dws_kernel(H, W, C, Cout, IPB, R0, L0, S):
    """Fused depthwise-3x3(+BN+SiLU) -> pointwise-1x1(+BN+SiLU), static shapes.

    One grid step processes IPB images stacked along the sublane (row) axis
    with row stride S (multiple of 8, >= H + 2) so per-image halos never touch.
    """
    WC = W * C
    WCo = W * Cout
    LROWS = (IPB - 1) * S + H     # virtual rows covered by the stacked pass

    def kernel(x_ref, wdw_ref, sdw_ref, bdw_ref, wbig_ref, spw_ref, bpw_ref,
               out_ref, xp_ref):
        # x_ref    : (IPB, H, W*C)    channel-packed NHWC input (no halo)
        # wdw_ref  : (9, W*C)         per-lane depthwise taps (kh*3+kw rows)
        # sdw/bdw  : (1, W*C)         folded BN scale / bias (depthwise), tiled
        # wbig_ref : (W*C, W*Cout)    block-diagonal pointwise weight
        # spw/bpw  : (1, W*Cout)      folded BN scale / bias (pointwise), tiled
        # out_ref  : (IPB, H, W*Cout) lane-dense output
        # xp_ref   : VMEM scratch holding the zero-halo'd stacked image(s)

        lanes = xp_ref.shape[1]

        # Build the halo'd image(s).  Only the 1-pixel halo ring is zeroed
        # (cheap, and unconditional -> safe when the "parallel" grid axis is
        # sharded across TensorCores); the interior is fully overwritten every
        # step, and rows/lanes outside the 9-tap read window are never read.
        for i in range(IPB):
            r = R0 + i * S
            xp_ref[r - 1:r, :] = jnp.zeros((1, lanes), jnp.float32)
            xp_ref[r + H:r + H + 1, :] = jnp.zeros((1, lanes), jnp.float32)
            xp_ref[r:r + H, 0:C] = jnp.zeros((H, C), jnp.float32)
            xp_ref[r:r + H, L0 + WC:L0 + WC + C] = jnp.zeros((H, C), jnp.float32)
            xp_ref[r:r + H, L0:L0 + WC] = x_ref[i]

        wdw = wdw_ref[...]                          # (9, W*C)

        # Depthwise 3x3: 9 shifted views * per-lane FMA on the VPU.  With
        # L0 == C the whole padded row (C + W*C + C lanes) sits inside one
        # 128-lane tile, so every kw shift is an intra-vreg lane rotate.
        # (Rows between stacked images are junk but strictly row-local; they
        # are never stored.)
        acc = jnp.zeros((LROWS, WC), jnp.float32)
        for kh in range(3):
            band = xp_ref[R0 - 1 + kh:R0 - 1 + kh + LROWS, :]
            for kw in range(3):
                lo = kw * C
                acc = acc + band[:, lo:lo + WC] * wdw[kh * 3 + kw]

        # Folded BN + SiLU (depthwise branch); exp and reciprocal both land on
        # the EUP slot instead of a VPU f32 divide.
        y = acc * sdw_ref[0] + bdw_ref[0]
        y = y * pl.reciprocal(1.0 + jnp.exp(-y), approx=False)

        # Pointwise 1x1 conv as one lane-dense MXU matmul against the
        # block-diagonal (W*C, W*Cout) weight -- no in-kernel reshapes.
        z = jnp.dot(y, wbig_ref[...], preferred_element_type=jnp.float32)

        # Folded BN + SiLU (pointwise branch), then lane-dense stores
        # (W*Cout == 128 at the demo shapes -> unmasked vst).
        z = z * spw_ref[0] + bpw_ref[0]
        z = z * pl.reciprocal(1.0 + jnp.exp(-z), approx=False)
        for i in range(IPB):
            out_ref[i] = z[i * S:i * S + H].astype(out_ref.dtype)

    return kernel


def pack_dws_params(w_dw, sdw, bdw, w_pw, spw, bpw, W):
    """One-time packing of DW-separable-conv parameters into the kernel's
    per-lane layout.  Call alongside weight loading, NOT per forward pass."""
    C = w_dw.shape[-1]
    Cout = w_pw.shape[1]
    w_dw_p = jnp.tile(w_dw.reshape(9, C), (1, W))            # (9, W*C)
    sdw_p = jnp.tile(sdw.reshape(1, C), (1, W))              # (1, W*C)
    bdw_p = jnp.tile(bdw.reshape(1, C), (1, W))              # (1, W*C)
    spw_p = jnp.tile(spw.reshape(1, Cout), (1, W))           # (1, W*Cout)
    bpw_p = jnp.tile(bpw.reshape(1, Cout), (1, W))           # (1, W*Cout)
    # Block-diagonal pointwise weight: block w is w_pw (C, Cout).
    w_big = jnp.einsum('uv,co->ucvo', jnp.eye(W, dtype=w_pw.dtype),
                       w_pw).reshape(W * C, W * Cout)
    return (w_dw_p, sdw_p, bdw_p, w_big, spw_p, bpw_p)


@partial(jax.jit, static_argnames=("images_per_step",))
def depthwise_separable_conv_nhwc(x_nhwc, packed_params, *, images_per_step=1):
    """Fused DW-sep conv in NHWC.

    x_nhwc:        (N, H, W, C) float32.
    packed_params: output of pack_dws_params (precomputed once).
    images_per_step: how many images to stack per grid step.  Use 1..N//2 on
      v7x (keeps >= 2 "parallel" steps, one per TensorCore); use N on v5e/v6e
      to fold the whole batch into a single step and amortize per-step cost.
    Returns (N, H, W, Cout) float32.
    """
    N, H, W, C = x_nhwc.shape
    w_dw_p, sdw_p, bdw_p, w_big, spw_p, bpw_p = packed_params
    WC = W * C
    WCo = w_big.shape[1]
    Cout = WCo // W

    IPB = images_per_step
    assert N % IPB == 0, "batch must be divisible by images_per_step"
    steps = N // IPB

    R0, L0 = 8, C                        # 8-row-aligned interior, single-lane-tile halo
    S = _round_up(H + 2, 8)              # row stride between stacked images
    LROWS = (IPB - 1) * S + H
    rows_scratch = _round_up(R0 + LROWS + 1, 8)
    lanes_scratch = _round_up(L0 + WC + C, 128)

    # Channel-packed view: (N, H, W, C) -> (N, H, W*C) is a free reshape
    # (no transpose, no extra HBM pass).
    x_packed = x_nhwc.reshape(N, H, WC)

    out_packed = pl.pallas_call(
        _make_dws_kernel(H, W, C, Cout, IPB, R0, L0, S),
        out_shape=jax.ShapeDtypeStruct((N, H, WCo), x_nhwc.dtype),
        grid_spec=pltpu.PrefetchScalarGridSpec(
            num_scalar_prefetch=0,
            grid=(steps,),
            in_specs=[
                pl.BlockSpec((IPB, H, WC), lambda s: (s, 0, 0)),
                pl.BlockSpec((9, WC), lambda s: (0, 0)),
                pl.BlockSpec((1, WC), lambda s: (0, 0)),
                pl.BlockSpec((1, WC), lambda s: (0, 0)),
                pl.BlockSpec((WC, WCo), lambda s: (0, 0)),
                pl.BlockSpec((1, WCo), lambda s: (0, 0)),
                pl.BlockSpec((1, WCo), lambda s: (0, 0)),
            ],
            out_specs=pl.BlockSpec((IPB, H, WCo), lambda s: (s, 0, 0)),
            scratch_shapes=[
                pltpu.VMEM((rows_scratch, lanes_scratch), jnp.float32)],
        ),
        compiler_params=pltpu.CompilerParams(
            dimension_semantics=("parallel",)),
    )(x_packed, w_dw_p, sdw_p, bdw_p, w_big, spw_p, bpw_p)

    return out_packed.reshape(N, H, W, Cout)


def reference(x_nchw, w_dw, sdw, bdw, w_pw, spw, bpw):
    """Plain-JAX NCHW reference (PyTorch semantics) for the correctness check."""
    x = jnp.transpose(x_nchw, (0, 2, 3, 1))
    xpad = jnp.pad(x, ((0, 0), (1, 1), (1, 1), (0, 0)))
    N, Hp2, Wp2, C = xpad.shape
    H, W = Hp2 - 2, Wp2 - 2
    acc = jnp.zeros((N, H, W, C), jnp.float32)
    for kh in range(3):
        for kw in range(3):
            acc = acc + xpad[:, kh:kh + H, kw:kw + W, :] * w_dw[kh, kw, :]
    y = acc * sdw[0] + bdw[0]
    y = y * jax.nn.sigmoid(y)
    z = jnp.einsum('nhwc,co->nhwo', y, w_pw)
    z = z * spw[0] + bpw[0]
    z = z * jax.nn.sigmoid(z)
    return jnp.transpose(z, (0, 3, 1, 2))


if __name__ == "__main__":
    key = jax.random.PRNGKey(0)
    N, Cin, Cout, H, W = 2, 4, 8, 16, 16
    eps = 1e-5

    ks = jax.random.split(key, 8)
    x = jax.random.normal(ks[0], (N, Cin, H, W), jnp.float32)   # NCHW (PyTorch)

    # depthwise conv weight: PyTorch (Cin, 1, 3, 3) -> kernel layout (3, 3, Cin)
    w_dw_torch = 0.1 * jax.random.normal(ks[1], (Cin, 1, 3, 3), jnp.float32)
    w_dw = jnp.transpose(w_dw_torch[:, 0], (1, 2, 0))            # (3, 3, Cin)

    # pointwise conv weight: PyTorch (Cout, Cin, 1, 1) -> (Cin, Cout)
    w_pw_torch = 0.1 * jax.random.normal(ks[2], (Cout, Cin, 1, 1), jnp.float32)
    w_pw = jnp.transpose(w_pw_torch[:, :, 0, 0], (1, 0))         # (Cin, Cout)

    # BatchNorm params (inference mode), folded to per-channel scale/bias.
    gamma_dw = 1.0 + 0.1 * jax.random.normal(ks[3], (Cin,), jnp.float32)
    beta_dw = 0.1 * jax.random.normal(ks[4], (Cin,), jnp.float32)
    gamma_pw = 1.0 + 0.1 * jax.random.normal(ks[5], (Cout,), jnp.float32)
    beta_pw = 0.1 * jax.random.normal(ks[6], (Cout,), jnp.float32)
    run_mean_dw = jnp.zeros((Cin,), jnp.float32)
    run_var_dw = jnp.ones((Cin,), jnp.float32)
    run_mean_pw = jnp.zeros((Cout,), jnp.float32)
    run_var_pw = jnp.ones((Cout,), jnp.float32)

    sdw = (gamma_dw / jnp.sqrt(run_var_dw + eps)).reshape(1, Cin)
    bdw = (beta_dw - run_mean_dw * gamma_dw / jnp.sqrt(run_var_dw + eps)).reshape(1, Cin)
    spw = (gamma_pw / jnp.sqrt(run_var_pw + eps)).reshape(1, Cout)
    bpw = (beta_pw - run_mean_pw * gamma_pw / jnp.sqrt(run_var_pw + eps)).reshape(1, Cout)

    # One-time parameter packing, hoisted out of the steady-state path.
    packed = pack_dws_params(w_dw, sdw, bdw, w_pw, spw, bpw, W)
    packed = jax.block_until_ready(packed)

    # Test-harness-only layout conversion (the kernel pipeline itself is NHWC
    # end-to-end with no transposes or padding passes).
    x_nhwc = jnp.transpose(x, (0, 2, 3, 1))

    ref = reference(x, w_dw, sdw, bdw, w_pw, spw, bpw)

    # v7x-friendly configuration: 2 "parallel" grid steps, one image per step
    # (one per TensorCore on v7x).
    out_split = depthwise_separable_conv_nhwc(x_nhwc, packed, images_per_step=1)
    out_split = jax.block_until_ready(out_split)
    out_split_nchw = jnp.transpose(out_split, (0, 3, 1, 2))
    assert out_split_nchw.shape == (N, Cout, H, W)
    assert jnp.allclose(out_split_nchw, ref, atol=2e-5, rtol=2e-5)

    # v5e/v6e-friendly configuration: whole batch folded into one grid step,
    # images stacked along the sublane axis (amortizes per-step overhead,
    # bigger MXU LHS).
    out_fold = depthwise_separable_conv_nhwc(x_nhwc, packed, images_per_step=N)
    out_fold = jax.block_until_ready(out_fold)
    out_fold_nchw = jnp.transpose(out_fold, (0, 3, 1, 2))
    assert out_fold_nchw.shape == (N, Cout, H, W)
    assert jnp.allclose(out_fold_nchw, ref, atol=2e-5, rtol=2e-5)

    print("KERNEL_OK")
</pallas_src>

<mosaic_0001>
module attributes {stable_mosaic.version = 11 : i64} {
  func.func @kernel(%arg0: i32, %arg1: memref<1x16x64xf32, #tpu.memory_space<vmem>>, %arg2: memref<9x64xf32, #tpu.memory_space<vmem>>, %arg3: memref<1x64xf32, #tpu.memory_space<vmem>>, %arg4: memref<1x64xf32, #tpu.memory_space<vmem>>, %arg5: memref<64x128xf32, #tpu.memory_space<vmem>>, %arg6: memref<1x128xf32, #tpu.memory_space<vmem>>, %arg7: memref<1x128xf32, #tpu.memory_space<vmem>>, %arg8: memref<1x16x128xf32, #tpu.memory_space<vmem>>, %arg9: memref<32x128xf32, #tpu.memory_space<vmem>>) attributes {dimension_semantics = [#tpu.dimension_semantics<parallel>], iteration_bounds = array<i64: 2>, scalar_prefetch = 0 : i64, scratch_operands = 1 : i64, tpu.core_type = #tpu.core_type<tc>, window_params = [{transform_indices = @transform_0, window_bounds = array<i64: 1, 16, 64>}, {pipeline_mode = #tpu.pipeline_mode<synchronous>, transform_indices = @transform_1, window_bounds = array<i64: 9, 64>}, {pipeline_mode = #tpu.pipeline_mode<synchronous>, transform_indices = @transform_2, window_bounds = array<i64: 1, 64>}, {pipeline_mode = #tpu.pipeline_mode<synchronous>, transform_indices = @transform_3, window_bounds = array<i64: 1, 64>}, {pipeline_mode = #tpu.pipeline_mode<synchronous>, transform_indices = @transform_4, window_bounds = array<i64: 64, 128>}, {pipeline_mode = #tpu.pipeline_mode<synchronous>, transform_indices = @transform_5, window_bounds = array<i64: 1, 128>}, {pipeline_mode = #tpu.pipeline_mode<synchronous>, transform_indices = @transform_6, window_bounds = array<i64: 1, 128>}, {transform_indices = @transform_7, window_bounds = array<i64: 1, 16, 128>}]} {
    %cst = arith.constant 0.000000e+00 : f32
    %0 = vector.broadcast %cst : f32 to vector<1x128xf32>
    %c7 = arith.constant 7 : index
    %c0 = arith.constant 0 : index
    %1 = vector.load %arg9[%c7, %c0] : memref<32x128xf32, #tpu.memory_space<vmem>>, vector<1x128xf32>
    tpu.vector_store %arg9[%c7, %c0], %0 {strides = array<i32>} : memref<32x128xf32, #tpu.memory_space<vmem>>, vector<1x128xf32>,
    %cst_0 = arith.constant 0.000000e+00 : f32
    %2 = vector.broadcast %cst_0 : f32 to vector<1x128xf32>
    %c24 = arith.constant 24 : index
    %c0_1 = arith.constant 0 : index
    %3 = vector.load %arg9[%c24, %c0_1] : memref<32x128xf32, #tpu.memory_space<vmem>>, vector<1x128xf32>
    tpu.vector_store %arg9[%c24, %c0_1], %2 {strides = array<i32>} : memref<32x128xf32, #tpu.memory_space<vmem>>, vector<1x128xf32>,
    %cst_2 = arith.constant 0.000000e+00 : f32
    %4 = vector.broadcast %cst_2 : f32 to vector<16x4xf32>
    %c8 = arith.constant 8 : index
    %c0_3 = arith.constant 0 : index
    %5 = vector.load %arg9[%c8, %c0_3] : memref<32x128xf32, #tpu.memory_space<vmem>>, vector<16x4xf32>
    tpu.vector_store %arg9[%c8, %c0_3], %4 {strides = array<i32>} : memref<32x128xf32, #tpu.memory_space<vmem>>, vector<16x4xf32>,
    %cst_4 = arith.constant 0.000000e+00 : f32
    %6 = vector.broadcast %cst_4 : f32 to vector<16x4xf32>
    %c8_5 = arith.constant 8 : index
    %c68 = arith.constant 68 : index
    %7 = vector.load %arg9[%c8_5, %c68] : memref<32x128xf32, #tpu.memory_space<vmem>>, vector<16x4xf32>
    tpu.vector_store %arg9[%c8_5, %c68], %6 {strides = array<i32>} : memref<32x128xf32, #tpu.memory_space<vmem>>, vector<16x4xf32>,
    %c0_6 = arith.constant 0 : index
    %c0_7 = arith.constant 0 : index
    %c0_8 = arith.constant 0 : index
    %8 = vector.load %arg1[%c0_6, %c0_7, %c0_8] : memref<1x16x64xf32, #tpu.memory_space<vmem>>, vector<1x16x64xf32>
    %9 = vector.shape_cast %8 : vector<1x16x64xf32> to vector<16x64xf32>
    %c8_9 = arith.constant 8 : index
    %c4 = arith.constant 4 : index
    %10 = vector.load %arg9[%c8_9, %c4] : memref<32x128xf32, #tpu.memory_space<vmem>>, vector<16x64xf32>
    tpu.vector_store %arg9[%c8_9, %c4], %9 {strides = array<i32>} : memref<32x128xf32, #tpu.memory_space<vmem>>, vector<16x64xf32>,
    %c0_10 = arith.constant 0 : index
    %c0_11 = arith.constant 0 : index
    %11 = vector.load %arg2[%c0_10, %c0_11] : memref<9x64xf32, #tpu.memory_space<vmem>>, vector<9x64xf32>
    %cst_12 = arith.constant 0.000000e+00 : f32
    %12 = vector.broadcast %cst_12 : f32 to vector<16x64xf32>
    %c7_13 = arith.constant 7 : index
    %c0_14 = arith.constant 0 : index
    %13 = vector.load %arg9[%c7_13, %c0_14] : memref<32x128xf32, #tpu.memory_space<vmem>>, vector<16x128xf32>
    %14 = vector.extract_strided_slice %13 {offsets = [0, 0], sizes = [16, 64], strides = [1, 1]} : vector<16x128xf32> to vector<16x64xf32>
    %15 = vector.extract_strided_slice %11 {offsets = [0, 0], sizes = [1, 64], strides = [1, 1]} : vector<9x64xf32> to vector<1x64xf32>
    %16 = vector.shape_cast %15 : vector<1x64xf32> to vector<64xf32>
    %17 = vector.shape_cast %16 : vector<64xf32> to vector<1x64xf32>
    %18 = vector.broadcast %17 : vector<1x64xf32> to vector<16x64xf32>
    %19 = arith.mulf %14, %18 : vector<16x64xf32>
    %20 = arith.addf %12, %19 : vector<16x64xf32>
    %21 = vector.extract_strided_slice %13 {offsets = [0, 4], sizes = [16, 64], strides = [1, 1]} : vector<16x128xf32> to vector<16x64xf32>
    %22 = vector.extract_strided_slice %11 {offsets = [1, 0], sizes = [1, 64], strides = [1, 1]} : vector<9x64xf32> to vector<1x64xf32>
    %23 = vector.shape_cast %22 : vector<1x64xf32> to vector<64xf32>
    %24 = vector.shape_cast %23 : vector<64xf32> to vector<1x64xf32>
    %25 = vector.broadcast %24 : vector<1x64xf32> to vector<16x64xf32>
    %26 = arith.mulf %21, %25 : vector<16x64xf32>
    %27 = arith.addf %20, %26 : vector<16x64xf32>
    %28 = vector.extract_strided_slice %13 {offsets = [0, 8], sizes = [16, 64], strides = [1, 1]} : vector<16x128xf32> to vector<16x64xf32>
    %29 = vector.extract_strided_slice %11 {offsets = [2, 0], sizes = [1, 64], strides = [1, 1]} : vector<9x64xf32> to vector<1x64xf32>
    %30 = vector.shape_cast %29 : vector<1x64xf32> to vector<64xf32>
    %31 = vector.shape_cast %30 : vector<64xf32> to vector<1x64xf32>
    %32 = vector.broadcast %31 : vector<1x64xf32> to vector<16x64xf32>
    %33 = arith.mulf %28, %32 : vector<16x64xf32>
    %34 = arith.addf %27, %33 : vector<16x64xf32>
    %c8_15 = arith.constant 8 : index
    %c0_16 = arith.constant 0 : index
    %35 = vector.load %arg9[%c8_15, %c0_16] : memref<32x128xf32, #tpu.memory_space<vmem>>, vector<16x128xf32>
    %36 = vector.extract_strided_slice %35 {offsets = [0, 0], sizes = [16, 64], strides = [1, 1]} : vector<16x128xf32> to vector<16x64xf32>
    %37 = vector.extract_strided_slice %11 {offsets = [3, 0], sizes = [1, 64], strides = [1, 1]} : vector<9x64xf32> to vector<1x64xf32>
    %38 = vector.shape_cast %37 : vector<1x64xf32> to vector<64xf32>
    %39 = vector.shape_cast %38 : vector<64xf32> to vector<1x64xf32>
    %40 = vector.broadcast %39 : vector<1x64xf32> to vector<16x64xf32>
    %41 = arith.mulf %36, %40 : vector<16x64xf32>
    %42 = arith.addf %34, %41 : vector<16x64xf32>
    %43 = vector.extract_strided_slice %35 {offsets = [0, 4], sizes = [16, 64], strides = [1, 1]} : vector<16x128xf32> to vector<16x64xf32>
    %44 = vector.extract_strided_slice %11 {offsets = [4, 0], sizes = [1, 64], strides = [1, 1]} : vector<9x64xf32> to vector<1x64xf32>
    %45 = vector.shape_cast %44 : vector<1x64xf32> to vector<64xf32>
    %46 = vector.shape_cast %45 : vector<64xf32> to vector<1x64xf32>
    %47 = vector.broadcast %46 : vector<1x64xf32> to vector<16x64xf32>
    %48 = arith.mulf %43, %47 : vector<16x64xf32>
    %49 = arith.addf %42, %48 : vector<16x64xf32>
    %50 = vector.extract_strided_slice %35 {offsets = [0, 8], sizes = [16, 64], strides = [1, 1]} : vector<16x128xf32> to vector<16x64xf32>
    %51 = vector.extract_strided_slice %11 {offsets = [5, 0], sizes = [1, 64], strides = [1, 1]} : vector<9x64xf32> to vector<1x64xf32>
    %52 = vector.shape_cast %51 : vector<1x64xf32> to vector<64xf32>
    %53 = vector.shape_cast %52 : vector<64xf32> to vector<1x64xf32>
    %54 = vector.broadcast %53 : vector<1x64xf32> to vector<16x64xf32>
    %55 = arith.mulf %50, %54 : vector<16x64xf32>
    %56 = arith.addf %49, %55 : vector<16x64xf32>
    %c9 = arith.constant 9 : index
    %c0_17 = arith.constant 0 : index
    %57 = vector.load %arg9[%c9, %c0_17] : memref<32x128xf32, #tpu.memory_space<vmem>>, vector<16x128xf32>
    %58 = vector.extract_strided_slice %57 {offsets = [0, 0], sizes = [16, 64], strides = [1, 1]} : vector<16x128xf32> to vector<16x64xf32>
    %59 = vector.extract_strided_slice %11 {offsets = [6, 0], sizes = [1, 64], strides = [1, 1]} : vector<9x64xf32> to vector<1x64xf32>
    %60 = vector.shape_cast %59 : vector<1x64xf32> to vector<64xf32>
    %61 = vector.shape_cast %60 : vector<64xf32> to vector<1x64xf32>
    %62 = vector.broadcast %61 : vector<1x64xf32> to vector<16x64xf32>
    %63 = arith.mulf %58, %62 : vector<16x64xf32>
    %64 = arith.addf %56, %63 : vector<16x64xf32>
    %65 = vector.extract_strided_slice %57 {offsets = [0, 4], sizes = [16, 64], strides = [1, 1]} : vector<16x128xf32> to vector<16x64xf32>
    %66 = vector.extract_strided_slice %11 {offsets = [7, 0], sizes = [1, 64], strides = [1, 1]} : vector<9x64xf32> to vector<1x64xf32>
    %67 = vector.shape_cast %66 : vector<1x64xf32> to vector<64xf32>
    %68 = vector.shape_cast %67 : vector<64xf32> to vector<1x64xf32>
    %69 = vector.broadcast %68 : vector<1x64xf32> to vector<16x64xf32>
    %70 = arith.mulf %65, %69 : vector<16x64xf32>
    %71 = arith.addf %64, %70 : vector<16x64xf32>
    %72 = vector.extract_strided_slice %57 {offsets = [0, 8], sizes = [16, 64], strides = [1, 1]} : vector<16x128xf32> to vector<16x64xf32>
    %73 = vector.extract_strided_slice %11 {offsets = [8, 0], sizes = [1, 64], strides = [1, 1]} : vector<9x64xf32> to vector<1x64xf32>
    %74 = vector.shape_cast %73 : vector<1x64xf32> to vector<64xf32>
    %75 = vector.shape_cast %74 : vector<64xf32> to vector<1x64xf32>
    %76 = vector.broadcast %75 : vector<1x64xf32> to vector<16x64xf32>
    %77 = arith.mulf %72, %76 : vector<16x64xf32>
    %78 = arith.addf %71, %77 : vector<16x64xf32>
    %c0_18 = arith.constant 0 : index
    %c0_19 = arith.constant 0 : index
    %79 = vector.load %arg3[%c0_18, %c0_19] : memref<1x64xf32, #tpu.memory_space<vmem>>, vector<1x64xf32>
    %80 = vector.shape_cast %79 : vector<1x64xf32> to vector<64xf32>
    %81 = vector.shape_cast %80 : vector<64xf32> to vector<1x64xf32>
    %82 = vector.broadcast %81 : vector<1x64xf32> to vector<16x64xf32>
    %83 = arith.mulf %78, %82 : vector<16x64xf32>
    %c0_20 = arith.constant 0 : index
    %c0_21 = arith.constant 0 : index
    %84 = vector.load %arg4[%c0_20, %c0_21] : memref<1x64xf32, #tpu.memory_space<vmem>>, vector<1x64xf32>
    %85 = vector.shape_cast %84 : vector<1x64xf32> to vector<64xf32>
    %86 = vector.shape_cast %85 : vector<64xf32> to vector<1x64xf32>
    %87 = vector.broadcast %86 : vector<1x64xf32> to vector<16x64xf32>
    %88 = arith.addf %83, %87 : vector<16x64xf32>
    %cst_22 = arith.constant 0.000000e+00 : f32
    %89 = vector.broadcast %cst_22 : f32 to vector<16x64xf32>
    %90 = arith.subf %89, %88 : vector<16x64xf32>
    %91 = math.exp %90 : vector<16x64xf32>
    %cst_23 = arith.constant 1.000000e+00 : f32
    %92 = vector.broadcast %cst_23 : f32 to vector<16x64xf32>
    %93 = arith.addf %92, %91 : vector<16x64xf32>
    %94 = tpu.reciprocal %93 : vector<16x64xf32> -> vector<16x64xf32>
    %95 = arith.mulf %88, %94 : vector<16x64xf32>
    %c0_24 = arith.constant 0 : index
    %c0_25 = arith.constant 0 : index
    %96 = vector.load %arg5[%c0_24, %c0_25] : memref<64x128xf32, #tpu.memory_space<vmem>>, vector<64x128xf32>
    %cst_26 = arith.constant dense<0.000000e+00> : vector<16x128xf32>
    %97 = tpu.matmul %95, %96, %cst_26 {dimension_numbers = #tpu.dot_dimension_numbers<[1], [0], [0], [1], [0, 0, 1, 1], [], []>} : vector<16x64xf32>, vector<64x128xf32>, vector<16x128xf32> -> vector<16x128xf32>
    %c0_27 = arith.constant 0 : index
    %c0_28 = arith.constant 0 : index
    %98 = vector.load %arg6[%c0_27, %c0_28] : memref<1x128xf32, #tpu.memory_space<vmem>>, vector<1x128xf32>
    %99 = vector.shape_cast %98 : vector<1x128xf32> to vector<128xf32>
    %100 = vector.shape_cast %99 : vector<128xf32> to vector<1x128xf32>
    %101 = vector.broadcast %100 : vector<1x128xf32> to vector<16x128xf32>
    %102 = arith.mulf %97, %101 : vector<16x128xf32>
    %c0_29 = arith.constant 0 : index
    %c0_30 = arith.constant 0 : index
    %103 = vector.load %arg7[%c0_29, %c0_30] : memref<1x128xf32, #tpu.memory_space<vmem>>, vector<1x128xf32>
    %104 = vector.shape_cast %103 : vector<1x128xf32> to vector<128xf32>
    %105 = vector.shape_cast %104 : vector<128xf32> to vector<1x128xf32>
    %106 = vector.broadcast %105 : vector<1x128xf32> to vector<16x128xf32>
    %107 = arith.addf %102, %106 : vector<16x128xf32>
    %cst_31 = arith.constant 0.000000e+00 : f32
    %108 = vector.broadcast %cst_31 : f32 to vector<16x128xf32>
    %109 = arith.subf %108, %107 : vector<16x128xf32>
    %110 = math.exp %109 : vector<16x128xf32>
    %cst_32 = arith.constant 1.000000e+00 : f32
    %111 = vector.broadcast %cst_32 : f32 to vector<16x128xf32>
    %112 = arith.addf %111, %110 : vector<16x128xf32>
    %113 = tpu.reciprocal %112 : vector<16x128xf32> -> vector<16x128xf32>
    %114 = arith.mulf %107, %113 : vector<16x128xf32>
    %c0_33 = arith.constant 0 : index
    %c0_34 = arith.constant 0 : index
    %c0_35 = arith.constant 0 : index
    %115 = vector.load %arg8[%c0_33, %c0_34, %c0_35] : memref<1x16x128xf32, #tpu.memory_space<vmem>>, vector<1x16x128xf32>
    %116 = vector.shape_cast %115 : vector<1x16x128xf32> to vector<16x128xf32>
    %117 = vector.shape_cast %114 : vector<16x128xf32> to vector<1x16x128xf32>
    tpu.vector_store %arg8[%c0_33, %c0_34, %c0_35], %117 {strides = array<i32>} : memref<1x16x128xf32, #tpu.memory_space<vmem>>, vector<1x16x128xf32>,
    return
  }
  func.func @transform_0(%arg0: i32) -> (i32, i32, i32) {
    %c0_i32 = arith.constant 0 : i32
    %c0_i32_0 = arith.constant 0 : i32
    %c0_i32_1 = arith.constant 0 : i32
    return %arg0, %c0_i32, %c0_i32_0 : i32, i32, i32
  }
  func.func @transform_1(%arg0: i32) -> (i32, i32) {
    %c0_i32 = arith.constant 0 : i32
    %c0_i32_0 = arith.constant 0 : i32
    %c0_i32_1 = arith.constant 0 : i32
    return %c0_i32, %c0_i32_0 : i32, i32
  }
  func.func @transform_2(%arg0: i32) -> (i32, i32) {
    %c0_i32 = arith.constant 0 : i32
    %c0_i32_0 = arith.constant 0 : i32
    %c0_i32_1 = arith.constant 0 : i32
    return %c0_i32, %c0_i32_0 : i32, i32
  }
  func.func @transform_3(%arg0: i32) -> (i32, i32) {
    %c0_i32 = arith.constant 0 : i32
    %c0_i32_0 = arith.constant 0 : i32
    %c0_i32_1 = arith.constant 0 : i32
    return %c0_i32, %c0_i32_0 : i32, i32
  }
  func.func @transform_4(%arg0: i32) -> (i32, i32) {
    %c0_i32 = arith.constant 0 : i32
    %c0_i32_0 = arith.constant 0 : i32
    %c0_i32_1 = arith.constant 0 : i32
    return %c0_i32, %c0_i32_0 : i32, i32
  }
  func.func @transform_5(%arg0: i32) -> (i32, i32) {
    %c0_i32 = arith.constant 0 : i32
    %c0_i32_0 = arith.constant 0 : i32
    %c0_i32_1 = arith.constant 0 : i32
    return %c0_i32, %c0_i32_0 : i32, i32
  }
  func.func @transform_6(%arg0: i32) -> (i32, i32) {
    %c0_i32 = arith.constant 0 : i32
    %c0_i32_0 = arith.constant 0 : i32
    %c0_i32_1 = arith.constant 0 : i32
    return %c0_i32, %c0_i32_0 : i32, i32
  }
  func.func @transform_7(%arg0: i32) -> (i32, i32, i32) {
    %c0_i32 = arith.constant 0 : i32
    %c0_i32_0 = arith.constant 0 : i32
    %c0_i32_1 = arith.constant 0 : i32
    return %arg0, %c0_i32, %c0_i32_0 : i32, i32, i32
  }
}

</mosaic_0001>

<bundles_post_ra>
// kernel: depthwise_separable_conv_nhwc.1
= control target key start
LH: loop header
LB: loop body
LE: loop exit
PB: predicated region body
PF: predicated region fallthrough
CT: control target
= control target key end

     0   :  { %s806_s24 = smov 0   ;;  %s884_s0 = inlined_call_operand.vmem [shape: f32[2,16,64], index: 0, kind: input, shape index: {}]   ;;  %s885_s1 = inlined_call_operand.vmem [shape: f32[9,64], index: 1, kind: input, shape index: {}]   ;;  %s886_s2 = inlined_call_operand.vmem [shape: f32[1,64], index: 2, kind: input, shape index: {}]   ;;  %s887_s3 = inlined_call_operand.vmem [shape: f32[1,64], index: 3, kind: input, shape index: {}]   ;;  %s888_s4 = inlined_call_operand.vmem [shape: f32[64,128], index: 4, kind: input, shape index: {}]   ;;  %s889_s5 = inlined_call_operand.vmem [shape: f32[1,128], index: 5, kind: input, shape index: {}]   ;;  %s890_s6 = inlined_call_operand.vmem [shape: f32[1,128], index: 6, kind: input, shape index: {}]   ;;  %s891_s7 = inlined_call_operand.vmem [shape: f32[2,16,128], index: 7, kind: output, shape index: {}]  }
   0x1 LB: > { %s659_s25 = sadd.s32 4294967295, %s759_s24   ;;  %p663_p0 = scmp.ge.s32.totalorder %s759_s24, 1  ;;  %s759_s24 = sphi %s806_s24, %s17_s24  }
   0x2   : > { %p237_p1 = scmp.lt.s32.totalorder %s759_s24, 3 }
   0x4   : > { %p238_p2 = pnand %p663_p0, %p237_p1 }
   0x5   : > { %p269_p3 = scmp.lt.s32.totalorder (!%p238_p2), %s659_s25, 1  ;;  %v304_v0 = vlaneseq (!%p238_p2)  ;;  %vm281_vm0 = vcmask (!%p238_p2), 31744   ;;  %vm284_vm1 = vcmask (!%p238_p2), 589344   ;;  %v761_v1 = vmov (!%p238_p2), 0.0   ;;  %v300_v3 = vld [vmem:[%s885_s1] sm:$0xff] (!%p238_p2)  ;;  %s762_s9 = smov (!%p238_p2), 4  }
   0x6   : > { %241 = sbr.rel (%p238_p2) target bundleno = 565 (0x235), region = 48  ;;  %279 = vst [vmem:[#allocation2 + $0x7] sm:$0x1] (!%p238_p2), %v761_v1  ;;  %280 = vst [vmem:[#allocation2 + $0x18] sm:$0x1] (!%p238_p2), %v761_v1  ;;  %s763_s10 = smov (!%p238_p2), 8  }
   0x7   : > { %v305_v2 = vshrl.u32 (!%p238_p2), %v304_v0, 7  ;;  %282 = vst.msk [vmem:[#allocation2 + $0x8] sm:$0xff] (!%p238_p2), %vm281_vm0, %v761_v1  ;;  %283 = vst.msk [vmem:[#allocation2 + $0x10] sm:$0xff] (!%p238_p2), %vm281_vm0, %v761_v1  ;;  %v668_v22 = vld [vmem:[%s885_s1 + $0x8] ss:$0 sm:$0xff] (!%p238_p2)  ;;  %vm297_vm2 = vcmask (!%p238_p2), 556064  }
   0x8   : > { %285 = vst.msk [vmem:[#allocation2 + $0x8] sm:$0xff] (!%p238_p2), %vm284_vm1, %v761_v1  ;;  %286 = vst.msk [vmem:[#allocation2 + $0x10] sm:$0xff] (!%p238_p2), %vm284_vm1, %v761_v1  ;;  %s764_s13 = smov (!%p238_p2), 124   ;;  %s765_s14 = smov (!%p238_p2), 120   ;;  %v482_v55 = vld [vmem:[%s888_s4] sm:$0xff] (!%p238_p2)  ;;  %v483_v56 = vld [vmem:[%s888_s4 + $0x8] sm:$0xff] (!%p238_p2) }
   0x9   : > { %v314_v4 = vsub.s32 (!%p238_p2), 1, %v305_v2  ;;  %v334_v5 = vsub.s32 (!%p238_p2), 2, %v305_v2  ;;  %v306_v6 = vsub.s32 (!%p238_p2), 0, %v305_v2  ;;  %v356_v7 = vsub.s32 (!%p238_p2), 3, %v305_v2  ;;  %v484_v58 = vld [vmem:[%s888_s4 + $0x10] sm:$0xff] (!%p238_p2)  ;;  %v485_v59 = vld [vmem:[%s888_s4 + $0x18] sm:$0xff] (!%p238_p2) }
   0xa   : > { %v406_v8 = vsub.s32 (!%p238_p2), 6, %v305_v2  ;;  %v364_v11 = vsub.s32 (!%p238_p2), 4, %v305_v2  ;;  %v384_v17 = vsub.s32 (!%p238_p2), 5, %v305_v2  ;;  %v414_v19 = vsub.s32 (!%p238_p2), 7, %v305_v2  ;;  %v486_v61 = vld [vmem:[%s888_s4 + $0x20] sm:$0xff] (!%p238_p2)  ;;  %v487_v62 = vld [vmem:[%s888_s4 + $0x28] sm:$0xff] (!%p238_p2) }
   0xb   : > { %v315_v10 = vrot.slane (!%p238_p2), %v300_v3, %v314_v4  ;;  %v307_v12 = vrot.slane (!%p238_p2), %v300_v3, %v306_v6  ;;  %v357_v13 = vrot.slane (!%p238_p2), %v300_v3, %v356_v7  ;;  %v335_v16 = vrot.slane (!%p238_p2), %v300_v3, %v334_v5  ;;  %v488_v0 = vld [vmem:[%s888_s4 + $0x30] sm:$0xff] (!%p238_p2)  ;;  %v489_v1 = vld [vmem:[%s888_s4 + $0x38] sm:$0xff] (!%p238_p2) }
   0xc   : > { %v407_v14 = vrot.slane (!%p238_p2), %v300_v3, %v406_v8  ;;  %v365_v18 = vrot.slane (!%p238_p2), %v300_v3, %v364_v11  ;;  %v385_v20 = vrot.slane (!%p238_p2), %v300_v3, %v384_v17  ;;  %v415_v21 = vrot.slane (!%p238_p2), %v300_v3, %v414_v19 }
   0xd   : > { %s893_s25 = smov (!%p269_p3, %s659_s25), 1  ;;  %317 = vrot.lane.b32.xlu1 %v315_v10, %s762_s9  ;;  %v708_v57 = vpack.c.bf16 %v483_v56, %v482_v55  ;;  %v712_v60 = vpack.c.bf16 %v485_v59, %v484_v58  ;;  %v716_v63 = vpack.c.bf16 %v487_v62, %v486_v61  ;;  %v720_v2 = vpack.c.bf16 %v489_v1, %v488_v0 }
   0xe   : > { %s677_s28 = sshll.u32 %s893_s25, 4  ;;  %vm490_vm3 = vcmask 523264  }
   0xf   : > { %s273_s8 = scalar_lea.vmem %s884_s0, %s677_s28  ;;  %709 = vmatprep.subr.bf16.mxu0 %v708_v57  ;;  %s278_s21 = scalar_lea.vmem %s891_s7, %s677_s28 }
  0x10   : > { %v287_v9 = vld [vmem:[%s273_s8] sm:$0xff]  ;;  %v288_v15 = vld [vmem:[%s273_s8 + $0x8] sm:$0xff]  ;;  %711 = vmatpush3.bf16.msra.mxu0 %v708_v57 }
  0x11   : > { %291 = vrot.lane.b32.xlu0 %v287_v9, %s762_s9  ;;  %337 = vrot.lane.b32.xlu1 %v335_v16, %s763_s10 }
  0x12   : > { %713 = vmatprep.subr.bf16.mxu0 %v712_v60 }
  0x14   : > { %715 = vmatpush3.bf16.msra.mxu0 %v712_v60 }
  0x15   : > { %293 = vrot.lane.b32.xlu0 %v288_v15, %s762_s9  ;;  %387 = vrot.lane.b32.xlu1 %v385_v20, %s763_s10 }
  0x16   : > { %717 = vmatprep.subr.bf16.mxu0 %v716_v63 }
  0x18   : > { %719 = vmatpush3.bf16.msra.mxu0 %v716_v63 }
  0x19   : > { %367 = vrot.lane.b32.xlu0 %v365_v18, %s762_s9  ;;  %437 = vrot.lane.b32.xlu1 %v668_v22, %s763_s10 }
  0x1a   : > { %721 = vmatprep.subr.bf16.mxu0 %v720_v2 }
  0x1c   : > { %723 = vmatpush3.bf16.msra.mxu0 %v720_v2 }
  0x1d   : > { %417 = vrot.lane.b32.xlu0 %v415_v21, %s762_s9 }
  0x7f   : > { %v318_v25 = vpop.permute.xlu1 %317 }
  0x83   : > { %v292_v23 = vpop.permute.xlu0 %291  ;;  %v338_v31 = vpop.permute.xlu1 %337 }
  0x84   : > { %298 = vst.msk [vmem:[#allocation2 + $0x8] sm:$0xff] %vm297_vm2, %v292_v23 }
  0x87   : > { %v294_v24 = vpop.permute.xlu0 %293  ;;  %v388_v45 = vpop.permute.xlu1 %387 }
  0x88   : > { %299 = vst.msk [vmem:[#allocation2 + $0x10] sm:$0xff] %vm297_vm2, %v294_v24 }
  0x8b   : > { %v302_v26 = vld [vmem:[#allocation2 + $0x7] sm:$0xff]  ;;  %v368_v37 = vpop.permute.xlu0 %367  ;;  %v438_v51 = vpop.permute.xlu1 %437 }
  0x8c   : > { %v352_v27 = vld [vmem:[#allocation2 + $0x8] sm:$0xff]  ;;  %v320_v28 = vmul.f32 %v318_v25, %v302_v26  ;;  %v308_v29 = vmul.f32 %v307_v12, %v302_v26  ;;  %v340_v35 = vmul.f32 %v338_v31, %v302_v26 }
  0x8d   : > { %v828_v30 = vmul.f32 %v357_v13, %v352_v27  ;;  %v370_v43 = vmul.f32 %v368_v37, %v352_v27  ;;  %v390_v46 = vmul.f32 %v388_v45, %v352_v27 }
  0x8e   : > { %324 = vrot.lane.b32.xlu0 %v320_v28, %s764_s13 }
  0x8f   : > { %v303_v32 = vld [vmem:[#allocation2 + $0xf] sm:$0xff]  ;;  %v418_v48 = vpop.permute.xlu0 %417 }
  0x90   : > { %v353_v33 = vld [vmem:[#allocation2 + $0x10] sm:$0xff]  ;;  %v321_v38 = vmul.f32 %v318_v25, %v303_v32  ;;  %v309_v39 = vmul.f32 %v307_v12, %v303_v32  ;;  %v341_v44 = vmul.f32 %v338_v31, %v303_v32  ;;  %v669_v25 = vld [vmem:[%s886_s2] ss:$0 sm:$0xff] }
  0x91   : > { %v402_v34 = vld [vmem:[#allocation2 + $0x9] sm:$0xff]  ;;  %v403_v36 = vld [vmem:[#allocation2 + $0x11] sm:$0xff]  ;;  %v359_v40 = vmul.f32 %v357_v13, %v353_v33  ;;  %v371_v47 = vmul.f32 %v368_v37, %v353_v33  ;;  %v391_v50 = vmul.f32 %v388_v45, %v353_v33 }
  0x92   : > { %344 = vrot.lane.b32.xlu0 %v340_v35, %s765_s14  ;;  %v408_v41 = vmul.f32 %v407_v14, %v402_v34  ;;  %v831_v42 = vmul.f32 %v407_v14, %v403_v36  ;;  %326 = vrot.lane.b32.xlu1 %v321_v38, %s764_s13  ;;  %v420_v49 = vmul.f32 %v418_v48, %v402_v34 }
  0x93   : > { %v440_v52 = vmul.f32 %v438_v51, %v402_v34  ;;  %v421_v53 = vmul.f32 %v418_v48, %v403_v36  ;;  %v441_v54 = vmul.f32 %v438_v51, %v403_v36  ;;  %v674_v51 = vld [vmem:[%s890_s6] ss:$0 sm:$0xff] }
  0x96   : > { %374 = vrot.lane.b32.xlu0 %v370_v43, %s764_s13  ;;  %346 = vrot.lane.b32.xlu1 %v341_v44, %s765_s14 }
  0x9a   : > { %394 = vrot.lane.b32.xlu0 %v390_v46, %s765_s14  ;;  %376 = vrot.lane.b32.xlu1 %v371_v47, %s764_s13 }
  0x9e   : > { %424 = vrot.lane.b32.xlu0 %v420_v49, %s764_s13  ;;  %396 = vrot.lane.b32.xlu1 %v391_v50, %s765_s14  ;;  %v673_v49 = vld [vmem:[%s889_s5] ss:$0 sm:$0xff] }
  0xa2   : > { %444 = vrot.lane.b32.xlu0 %v440_v52, %s765_s14  ;;  %426 = vrot.lane.b32.xlu1 %v421_v53, %s764_s13 }
  0xa6   : > { %446 = vrot.lane.b32.xlu1 %v441_v54, %s765_s14 }
 0x100   : > { %v325_v3 = vpop.permute.xlu0 %324 }
 0x101   : > { %v330_v4 = vadd.f32 %v325_v3, %v308_v29  ;;  %v670_v29 = vld [vmem:[%s887_s3] ss:$0 sm:$0xff] }
 0x104   : > { %v345_v5 = vpop.permute.xlu0 %344  ;;  %v327_v6 = vpop.permute.xlu1 %326 }
 0x105   : > { %v350_v7 = vadd.f32 %v345_v5, %v330_v4  ;;  %v331_v9 = vadd.f32 %v327_v6, %v309_v39 }
 0x107   : > { %v360_v8 = vadd.f32 %v828_v30, %v350_v7 }
 0x108   : > { %v375_v10 = vpop.permute.xlu0 %374  ;;  %v347_v11 = vpop.permute.xlu1 %346 }
 0x109   : > { %v351_v12 = vadd.f32 %v347_v11, %v331_v9  ;;  %v380_v13 = vadd.f32 %v375_v10, %v360_v8 }
 0x10b   : > { %v361_v14 = vadd.f32 %v359_v40, %v351_v12 }
 0x10c   : > { %v395_v15 = vpop.permute.xlu0 %394  ;;  %v377_v16 = vpop.permute.xlu1 %376 }
 0x10d   : > { %v400_v17 = vadd.f32 %v395_v15, %v380_v13  ;;  %v381_v19 = vadd.f32 %v377_v16, %v361_v14 }
 0x10f   : > { %v410_v18 = vadd.f32 %v408_v41, %v400_v17 }
 0x110   : > { %v425_v20 = vpop.permute.xlu0 %424  ;;  %v397_v21 = vpop.permute.xlu1 %396 }
 0x111   : > { %v401_v22 = vadd.f32 %v397_v21, %v381_v19  ;;  %v430_v23 = vadd.f32 %v425_v20, %v410_v18 }
 0x113   : > { %v411_v24 = vadd.f32 %v831_v42, %v401_v22 }
 0x114   : > { %v445_v26 = vpop.permute.xlu0 %444  ;;  %v427_v27 = vpop.permute.xlu1 %426 }
 0x115   : > { %v450_v28 = vadd.f32 %v445_v26, %v430_v23  ;;  %v431_v31 = vadd.f32 %v427_v27, %v411_v24 }
 0x117   : > { %v459_v30 = vmul.f32 %v669_v25, %v450_v28 }
 0x118   : > { %v447_v32 = vpop.permute.xlu1 %446 }
 0x119   : > { %v468_v33 = vadd.f32 %v670_v29, %v459_v30  ;;  %v451_v34 = vadd.f32 %v447_v32, %v431_v31 }
 0x11b   : > { %v470_v35 = vsub.f32 0.0, %v468_v33  ;;  %v460_v36 = vmul.f32 %v669_v25, %v451_v34 }
 0x11d   : > { %v472_v37 = vmul.f32 1.442695, %v470_v35  ;;  %v469_v38 = vadd.f32 %v670_v29, %v460_v36 }
 0x11f   : > { %737 = vpow2.f32 %v472_v37  ;;  %v471_v39 = vsub.f32 0.0, %v469_v38 }
 0x121   : > { %v474_v40 = vmul.f32 1.442695, %v471_v39 }
 0x123   : > { %739 = vpow2.f32 %v474_v40 }
 0x129   : > { %v738_v41 = vpop.eup %737 }
 0x12a   : > { %v476_v42 = vadd.f32 1.0, %v738_v41 }
 0x12c   : > { %741 = vrcp.f32 %v476_v42 }
 0x12d   : > { %v740_v43 = vpop.eup %739 }
 0x12e   : > { %v477_v44 = vadd.f32 1.0, %v740_v43 }
 0x130   : > { %743 = vrcp.f32 %v477_v44 }
 0x136   : > { %v742_v45 = vpop.eup %741 }
 0x137   : > { %v480_v46 = vmul.f32 %v742_v45, %v468_v33 }
 0x139   : > { %705 = vmatprep.mubr.msk.f32.mxu0 %vm490_vm3, %v480_v46 }
 0x13a   : > { %v744_v47 = vpop.eup %743 }
 0x13b   : > { %v481_v48 = vmul.f32 %v744_v47, %v469_v38 }
 0x13d   : > { %706 = vmatmul.mubr.msk.f32.vlgmr.msra.gmra.mrb[0].mxu0 %vm490_vm3, %v481_v48 }
 0x210   : > { %v707_v50 = vpop.f32.mrb[0].mxu0 }
 0x211   : > { %v580_v52 = vmul.f32 %v707_v50, %v673_v49  ;;  %v563_v53 = vpop.f32.mrb[1].mxu0 }
 0x212   : > { %v579_v54 = vmul.f32 %v673_v49, %v563_v53 }
 0x213   : > { %v589_v55 = vadd.f32 %v674_v51, %v580_v52 }
 0x214   : > { %v588_v56 = vadd.f32 %v674_v51, %v579_v54 }
 0x215   : > { %v591_v57 = vsub.f32 0.0, %v589_v55 }
 0x216   : > { %v590_v58 = vsub.f32 0.0, %v588_v56 }
 0x217   : > { %v594_v59 = vmul.f32 1.442695, %v591_v57 }
 0x218   : > { %v592_v60 = vmul.f32 1.442695, %v590_v58 }
 0x219   : > { %745 = vpow2.f32 %v594_v59 }
 0x21a   : > { %747 = vpow2.f32 %v592_v60 }
 0x223   : > { %v746_v61 = vpop.eup %745 }
 0x224   : > { %v748_v62 = vpop.eup %747  ;;  %v597_v63 = vadd.f32 1.0, %v746_v61 }
 0x225   : > { %v596_v0 = vadd.f32 1.0, %v748_v62 }
 0x226   : > { %749 = vrcp.f32 %v597_v63 }
 0x227   : > { %751 = vrcp.f32 %v596_v0 }
 0x230   : > { %v750_v1 = vpop.eup %749 }
 0x231   : > { %v752_v2 = vpop.eup %751  ;;  %v601_v3 = vmul.f32 %v750_v1, %v589_v55 }
 0x232   : > { %v600_v4 = vmul.f32 %v752_v2, %v588_v56 }
 0x233   : > { %603 = vst [vmem:[%s278_s21 + $0x8] sm:$0xff] %v601_v3 }
 0x234   : > { %602 = vst [vmem:[%s278_s21] sm:$0xff] %v600_v4 }
 0x235 PF: > { %s17_s24 = sadd.s32 1, %s759_s24  }
 0x236   : > { %p14_p4 = scmp.ge.s32.totalorder %s17_s24, 4  }
 0x238   :  { %16 = sbr.rel (!%p14_p4) target bundleno = 1 (0x1), region = 78 }

</bundles_post_ra>
